<compile_context>
chip_gen: v6e
topology: v6e:2x2x1
jax: 0.10.0
libtpu: 0.0.40
codegen_flags: <defaults>
</compile_context>

<pallas_src>
import functools

import jax
import jax.numpy as jnp
from jax.experimental import pallas as pl
from jax.experimental.pallas import tpu as pltpu

# ---------------------------------------------------------------------------
# Problem sizes (from the PyTorch __init__)
# ---------------------------------------------------------------------------
SIZE_IN = 4 + 4 + 4 + 4 + 1 + 4 * 3 + 4 * 3  # = 41
H1, H2, H3 = 64, 32, 24

LANE = 128      # padded feature width of the hidden layers
SUBLANE = 8     # f32 sublane grain: batch tiles kept multiples of this


def _round_up(n, m):
    return ((n + m - 1) // m) * m


def _elu_f32(x):
    # ELU(alpha=1.0) in f32: x if x > 0 else expm1(x).
    # expm1 via the tanh identity: expm1(x) = tanh(x/2) * (exp(x) + 1).
    # Numerically stable for small |x| and uses only exp/tanh (EUP ops with
    # guaranteed Mosaic lowerings).
    em1 = jnp.tanh(0.5 * x) * (jnp.exp(x) + 1.0)
    return jnp.where(x > 0, x, em1)


# ---------------------------------------------------------------------------
# Pallas kernel: fused 3-layer MLP (bf16 matmuls -> f32 bias + ELU)
# ---------------------------------------------------------------------------
def _mlp_kernel(x_ref, w_ref, b_ref, o_ref, xpad_ref):
    # x_ref:    (tile, 41)  f32   raw privileged observations
    # w_ref:    (3, 128, 128) bf16 packed, zero-padded weights
    # b_ref:    (3, 128)    f32   packed, zero-padded biases
    # o_ref:    (tile, 24)  f32   output
    # xpad_ref: (tile, 128) bf16  VMEM scratch: lane-padded layer-1 input
    b = b_ref[...]

    # Zero-fill then write the 41 real features so lanes 41..127 are exactly 0
    # every step (safe under megacore grid sharding); layer-1 dot stays a fully
    # aligned 128x128 MXU matmul.
    xpad_ref[...] = jnp.zeros_like(xpad_ref)
    xpad_ref[:, :SIZE_IN] = x_ref[...].astype(jnp.bfloat16)

    h = jnp.dot(xpad_ref[...], w_ref[0],
                preferred_element_type=jnp.float32) + b[0:1]
    h = _elu_f32(h)                                           # (tile, 128)

    h = jnp.dot(h.astype(jnp.bfloat16), w_ref[1],
                preferred_element_type=jnp.float32) + b[1:2]
    h = _elu_f32(h)                                           # (tile, 128)

    h = jnp.dot(h.astype(jnp.bfloat16), w_ref[2],
                preferred_element_type=jnp.float32)           # (tile, 128)
    o_ref[...] = _elu_f32(h[:, :H3] + b[2:3, :H3])            # (tile, 24)


# ---------------------------------------------------------------------------
# One-time parameter packing (call OUTSIDE the per-step forward and cache)
# ---------------------------------------------------------------------------
def prepare_params(params):
    """Pack nn.Linear params into padded TPU slabs. Do this once and cache."""
    w1, b1, w2, b2, w3, b3 = params
    W = jnp.zeros((3, LANE, LANE), dtype=jnp.float32)
    W = W.at[0, :SIZE_IN, :H1].set(w1.astype(jnp.float32))
    W = W.at[1, :H1, :H2].set(w2.astype(jnp.float32))
    W = W.at[2, :H2, :H3].set(w3.astype(jnp.float32))
    Bv = jnp.zeros((3, LANE), dtype=jnp.float32)
    Bv = Bv.at[0, :H1].set(b1.astype(jnp.float32))
    Bv = Bv.at[1, :H2].set(b2.astype(jnp.float32))
    Bv = Bv.at[2, :H3].set(b3.astype(jnp.float32))
    return W.astype(jnp.bfloat16), Bv


# ---------------------------------------------------------------------------
# Tile selection
# ---------------------------------------------------------------------------
def _pick_tile(batch, batch_tile):
    bp = _round_up(batch, SUBLANE)
    if bp <= 512:
        return bp                      # tiny batch: a single grid step
    # Want >= 2 grid steps (so both v7x TensorCores get work) while capping the
    # per-step VMEM footprint at batch_tile rows.
    half = _round_up(pl.cdiv(bp, 2), SUBLANE)
    return min(batch_tile, half)


# ---------------------------------------------------------------------------
# Forward
# ---------------------------------------------------------------------------
@functools.partial(jax.jit, static_argnames=("batch_tile",))
def priviliged_encoder_forward(x, w_packed, b_packed, batch_tile=2048):
    """x: (B, 41) float32.  Returns (B, 24) float32.

    Note: recompiles per distinct batch size; bucket B at the caller if the
    batch varies frame to frame.
    """
    B = x.shape[0]
    tile = _pick_tile(B, batch_tile)
    grid = (pl.cdiv(B, tile),)

    return pl.pallas_call(
        _mlp_kernel,
        out_shape=jax.ShapeDtypeStruct((B, H3), jnp.float32),
        grid_spec=pl.GridSpec(
            grid=grid,
            in_specs=[
                # raw input tile; last dim == full array dim (41) is legal
                pl.BlockSpec((tile, SIZE_IN), lambda i: (i, 0)),
                # constant-index packed weights/bias -> fetched once
                pl.BlockSpec((3, LANE, LANE), lambda i: (0, 0, 0)),
                pl.BlockSpec((3, LANE), lambda i: (0, 0)),
            ],
            # output last dim == full array dim (24): masked vst, no slice pass
            out_specs=pl.BlockSpec((tile, H3), lambda i: (i, 0)),
            scratch_shapes=[pltpu.VMEM((tile, LANE), jnp.bfloat16)],
        ),
        compiler_params=pltpu.CompilerParams(
            dimension_semantics=("parallel",),  # batch steps across both TCs on v7x
        ),
    )(x, w_packed, b_packed)


# ---------------------------------------------------------------------------
# Deterministic parameter init (synthetic; shapes match the nn.Linear layers)
# ---------------------------------------------------------------------------
def make_params(key):
    ks = jax.random.split(key, 6)

    def linear(kw, kb, fan_in, fan_out):
        bound = 1.0 / jnp.sqrt(fan_in)
        w = jax.random.uniform(kw, (fan_in, fan_out), jnp.float32, -bound, bound)
        b = jax.random.uniform(kb, (fan_out,), jnp.float32, -bound, bound)
        return w, b

    w1, b1 = linear(ks[0], ks[1], SIZE_IN, H1)
    w2, b2 = linear(ks[2], ks[3], H1, H2)
    w3, b3 = linear(ks[4], ks[5], H2, H3)
    return (w1, b1, w2, b2, w3, b3)


def reference_forward(x, params):
    """Pure-JAX reference mimicking the kernel's bf16 operand storage (f32 math).

    Note: bf16 operand rounding means ~1e-3 relative drift vs a true f32
    PyTorch teacher — fine for an RL encoder, flag if exact f32 is required.
    """
    w1, b1, w2, b2, w3, b3 = params

    def q(a):  # bf16 round-trip to match kernel operand storage
        return a.astype(jnp.bfloat16).astype(jnp.float32)

    def elu(v):
        return jnp.where(v > 0, v, jnp.expm1(v))

    h = elu(q(x) @ q(w1) + b1)
    h = elu(q(h) @ q(w2) + b2)
    return elu(q(h) @ q(w3) + b3)


if __name__ == "__main__":
    key = jax.random.PRNGKey(0)
    k_x, k_p, k_x2 = jax.random.split(key, 3)

    params = make_params(k_p)
    # One-time packing/padding of the weights (outside the jitted per-step call).
    w_packed, b_packed = prepare_params(params)

    # Small batch (per-env-step privileged observations).  Also exercises the
    # partial-block masking path (6 real rows inside an 8-row tile).
    B = 6
    x = jax.random.normal(k_x, (B, SIZE_IN), dtype=jnp.float32)
    out = jax.block_until_ready(priviliged_encoder_forward(x, w_packed, b_packed))
    ref = reference_forward(x, params)
    assert out.shape == (B, H3), out.shape
    max_err = float(jnp.max(jnp.abs(out - ref)))
    assert max_err < 5e-3, max_err

    # Larger batch: exercises the multi-step grid (2 tiles, partial last block,
    # megacore-parallel batch axis).
    B2 = 1000
    x2 = jax.random.normal(k_x2, (B2, SIZE_IN), dtype=jnp.float32)
    out2 = jax.block_until_ready(priviliged_encoder_forward(x2, w_packed, b_packed))
    ref2 = reference_forward(x2, params)
    assert out2.shape == (B2, H3), out2.shape
    max_err2 = float(jnp.max(jnp.abs(out2 - ref2)))
    assert max_err2 < 5e-3, max_err2

    print("KERNEL_OK")
</pallas_src>

<mosaic_0001>
module attributes {stable_mosaic.version = 11 : i64} {
  func.func @_mlp_kernel(%arg0: i32, %arg1: memref<8x41xf32, #tpu.memory_space<vmem>>, %arg2: memref<3x128x128xbf16, #tpu.memory_space<vmem>>, %arg3: memref<3x128xf32, #tpu.memory_space<vmem>>, %arg4: memref<8x24xf32, #tpu.memory_space<vmem>>, %arg5: memref<8x128xbf16, #tpu.memory_space<vmem>>) attributes {dimension_semantics = [#tpu.dimension_semantics<parallel>], iteration_bounds = array<i64: 1>, scalar_prefetch = 0 : i64, scratch_operands = 1 : i64, tpu.core_type = #tpu.core_type<tc>, window_params = [{transform_indices = @transform_0, window_bounds = array<i64: 8, 41>}, {pipeline_mode = #tpu.pipeline_mode<synchronous>, transform_indices = @transform_1, window_bounds = array<i64: 3, 128, 128>}, {pipeline_mode = #tpu.pipeline_mode<synchronous>, transform_indices = @transform_2, window_bounds = array<i64: 3, 128>}, {transform_indices = @transform_3, window_bounds = array<i64: 8, 24>}]} {
    %c0 = arith.constant 0 : index
    %c0_0 = arith.constant 0 : index
    %0 = vector.load %arg3[%c0, %c0_0] : memref<3x128xf32, #tpu.memory_space<vmem>>, vector<3x128xf32>
    %cst = arith.constant 0.000000e+00 : bf16
    %1 = vector.broadcast %cst : bf16 to vector<8x128xbf16>
    %c0_1 = arith.constant 0 : index
    %c0_2 = arith.constant 0 : index
    %2 = vector.load %arg5[%c0_1, %c0_2] : memref<8x128xbf16, #tpu.memory_space<vmem>>, vector<8x128xbf16>
    tpu.vector_store %arg5[%c0_1, %c0_2], %1 {strides = array<i32>} : memref<8x128xbf16, #tpu.memory_space<vmem>>, vector<8x128xbf16>,
    %c0_3 = arith.constant 0 : index
    %c0_4 = arith.constant 0 : index
    %3 = vector.load %arg1[%c0_3, %c0_4] : memref<8x41xf32, #tpu.memory_space<vmem>>, vector<8x41xf32>
    %4 = arith.truncf %3 : vector<8x41xf32> to vector<8x41xbf16>
    %c0_5 = arith.constant 0 : index
    %c0_6 = arith.constant 0 : index
    %5 = vector.load %arg5[%c0_5, %c0_6] : memref<8x128xbf16, #tpu.memory_space<vmem>>, vector<8x41xbf16>
    tpu.vector_store %arg5[%c0_5, %c0_6], %4 {strides = array<i32>} : memref<8x128xbf16, #tpu.memory_space<vmem>>, vector<8x41xbf16>,
    %c0_7 = arith.constant 0 : index
    %c0_8 = arith.constant 0 : index
    %6 = vector.load %arg5[%c0_7, %c0_8] : memref<8x128xbf16, #tpu.memory_space<vmem>>, vector<8x128xbf16>
    %c0_9 = arith.constant 0 : index
    %c0_10 = arith.constant 0 : index
    %c0_11 = arith.constant 0 : index
    %7 = vector.load %arg2[%c0_9, %c0_10, %c0_11] : memref<3x128x128xbf16, #tpu.memory_space<vmem>>, vector<1x128x128xbf16>
    %8 = vector.shape_cast %7 : vector<1x128x128xbf16> to vector<128x128xbf16>
    %cst_12 = arith.constant dense<0.000000e+00> : vector<8x128xf32>
    %9 = tpu.matmul %6, %8, %cst_12 {dimension_numbers = #tpu.dot_dimension_numbers<[1], [0], [0], [1], [0, 0, 1, 1], [], []>} : vector<8x128xbf16>, vector<128x128xbf16>, vector<8x128xf32> -> vector<8x128xf32>
    %10 = vector.extract_strided_slice %0 {offsets = [0, 0], sizes = [1, 128], strides = [1, 1]} : vector<3x128xf32> to vector<1x128xf32>
    %11 = vector.broadcast %10 : vector<1x128xf32> to vector<8x128xf32>
    %12 = arith.addf %9, %11 : vector<8x128xf32>
    %cst_13 = arith.constant 5.000000e-01 : f32
    %13 = vector.broadcast %cst_13 : f32 to vector<8x128xf32>
    %14 = arith.mulf %13, %12 : vector<8x128xf32>
    %15 = math.tanh %14 : vector<8x128xf32>
    %16 = math.exp %12 : vector<8x128xf32>
    %cst_14 = arith.constant 1.000000e+00 : f32
    %17 = vector.broadcast %cst_14 : f32 to vector<8x128xf32>
    %18 = arith.addf %16, %17 : vector<8x128xf32>
    %19 = arith.mulf %15, %18 : vector<8x128xf32>
    %cst_15 = arith.constant 0.000000e+00 : f32
    %20 = vector.broadcast %cst_15 : f32 to vector<8x128xf32>
    %21 = arith.cmpf ogt, %12, %20 : vector<8x128xf32>
    %22 = arith.select %21, %12, %19 : vector<8x128xi1>, vector<8x128xf32>
    %23 = arith.truncf %22 : vector<8x128xf32> to vector<8x128xbf16>
    %c1 = arith.constant 1 : index
    %c0_16 = arith.constant 0 : index
    %c0_17 = arith.constant 0 : index
    %24 = vector.load %arg2[%c1, %c0_16, %c0_17] : memref<3x128x128xbf16, #tpu.memory_space<vmem>>, vector<1x128x128xbf16>
    %25 = vector.shape_cast %24 : vector<1x128x128xbf16> to vector<128x128xbf16>
    %cst_18 = arith.constant dense<0.000000e+00> : vector<8x128xf32>
    %26 = tpu.matmul %23, %25, %cst_18 {dimension_numbers = #tpu.dot_dimension_numbers<[1], [0], [0], [1], [0, 0, 1, 1], [], []>} : vector<8x128xbf16>, vector<128x128xbf16>, vector<8x128xf32> -> vector<8x128xf32>
    %27 = vector.extract_strided_slice %0 {offsets = [1, 0], sizes = [1, 128], strides = [1, 1]} : vector<3x128xf32> to vector<1x128xf32>
    %28 = vector.broadcast %27 : vector<1x128xf32> to vector<8x128xf32>
    %29 = arith.addf %26, %28 : vector<8x128xf32>
    %cst_19 = arith.constant 5.000000e-01 : f32
    %30 = vector.broadcast %cst_19 : f32 to vector<8x128xf32>
    %31 = arith.mulf %30, %29 : vector<8x128xf32>
    %32 = math.tanh %31 : vector<8x128xf32>
    %33 = math.exp %29 : vector<8x128xf32>
    %cst_20 = arith.constant 1.000000e+00 : f32
    %34 = vector.broadcast %cst_20 : f32 to vector<8x128xf32>
    %35 = arith.addf %33, %34 : vector<8x128xf32>
    %36 = arith.mulf %32, %35 : vector<8x128xf32>
    %cst_21 = arith.constant 0.000000e+00 : f32
    %37 = vector.broadcast %cst_21 : f32 to vector<8x128xf32>
    %38 = arith.cmpf ogt, %29, %37 : vector<8x128xf32>
    %39 = arith.select %38, %29, %36 : vector<8x128xi1>, vector<8x128xf32>
    %40 = arith.truncf %39 : vector<8x128xf32> to vector<8x128xbf16>
    %c2 = arith.constant 2 : index
    %c0_22 = arith.constant 0 : index
    %c0_23 = arith.constant 0 : index
    %41 = vector.load %arg2[%c2, %c0_22, %c0_23] : memref<3x128x128xbf16, #tpu.memory_space<vmem>>, vector<1x128x128xbf16>
    %42 = vector.shape_cast %41 : vector<1x128x128xbf16> to vector<128x128xbf16>
    %cst_24 = arith.constant dense<0.000000e+00> : vector<8x128xf32>
    %43 = tpu.matmul %40, %42, %cst_24 {dimension_numbers = #tpu.dot_dimension_numbers<[1], [0], [0], [1], [0, 0, 1, 1], [], []>} : vector<8x128xbf16>, vector<128x128xbf16>, vector<8x128xf32> -> vector<8x128xf32>
    %44 = vector.extract_strided_slice %43 {offsets = [0, 0], sizes = [8, 24], strides = [1, 1]} : vector<8x128xf32> to vector<8x24xf32>
    %45 = vector.extract_strided_slice %0 {offsets = [2, 0], sizes = [1, 24], strides = [1, 1]} : vector<3x128xf32> to vector<1x24xf32>
    %46 = vector.broadcast %45 : vector<1x24xf32> to vector<8x24xf32>
    %47 = arith.addf %44, %46 : vector<8x24xf32>
    %cst_25 = arith.constant 5.000000e-01 : f32
    %48 = vector.broadcast %cst_25 : f32 to vector<8x24xf32>
    %49 = arith.mulf %48, %47 : vector<8x24xf32>
    %50 = math.tanh %49 : vector<8x24xf32>
    %51 = math.exp %47 : vector<8x24xf32>
    %cst_26 = arith.constant 1.000000e+00 : f32
    %52 = vector.broadcast %cst_26 : f32 to vector<8x24xf32>
    %53 = arith.addf %51, %52 : vector<8x24xf32>
    %54 = arith.mulf %50, %53 : vector<8x24xf32>
    %cst_27 = arith.constant 0.000000e+00 : f32
    %55 = vector.broadcast %cst_27 : f32 to vector<8x24xf32>
    %56 = arith.cmpf ogt, %47, %55 : vector<8x24xf32>
    %57 = arith.select %56, %47, %54 : vector<8x24xi1>, vector<8x24xf32>
    %c0_28 = arith.constant 0 : index
    %c0_29 = arith.constant 0 : index
    %58 = vector.load %arg4[%c0_28, %c0_29] : memref<8x24xf32, #tpu.memory_space<vmem>>, vector<8x24xf32>
    tpu.vector_store %arg4[%c0_28, %c0_29], %57 {strides = array<i32>} : memref<8x24xf32, #tpu.memory_space<vmem>>, vector<8x24xf32>,
    return
  }
  func.func @transform_0(%arg0: i32) -> (i32, i32) {
    %c0_i32 = arith.constant 0 : i32
    %c0_i32_0 = arith.constant 0 : i32
    return %arg0, %c0_i32 : i32, i32
  }
  func.func @transform_1(%arg0: i32) -> (i32, i32, i32) {
    %c0_i32 = arith.constant 0 : i32
    %c0_i32_0 = arith.constant 0 : i32
    %c0_i32_1 = arith.constant 0 : i32
    %c0_i32_2 = arith.constant 0 : i32
    return %c0_i32, %c0_i32_0, %c0_i32_1 : i32, i32, i32
  }
  func.func @transform_2(%arg0: i32) -> (i32, i32) {
    %c0_i32 = arith.constant 0 : i32
    %c0_i32_0 = arith.constant 0 : i32
    %c0_i32_1 = arith.constant 0 : i32
    return %c0_i32, %c0_i32_0 : i32, i32
  }
  func.func @transform_3(%arg0: i32) -> (i32, i32) {
    %c0_i32 = arith.constant 0 : i32
    %c0_i32_0 = arith.constant 0 : i32
    return %arg0, %c0_i32 : i32, i32
  }
}

</mosaic_0001>

<bundles_post_ra>
// kernel: priviliged_encoder_forward.1
= control target key start
LH: loop header
LB: loop body
LE: loop exit
PB: predicated region body
PF: predicated region fallthrough
CT: control target
= control target key end

     0   :  { %8 = vsyncpa [#allocation4], 0  ;;  %s744_s0 = inlined_call_operand.hbm [shape: f32[6,41], index: 0, kind: input, shape index: {}]   ;;  %s745_s1 = inlined_call_operand.hbm [shape: bf16[3,128,128], index: 1, kind: input, shape index: {}]   ;;  %s746_s2 = inlined_call_operand.hbm [shape: f32[3,128], index: 2, kind: input, shape index: {}]   ;;  %s747_s3 = inlined_call_operand.hbm [shape: f32[6,24], index: 3, kind: output, shape index: {}]  }
   0x1   :  { %9 = vsyncpa [#allocation7], 0 }
   0x2   :  { %10 = vsyncpa [#allocation5], 0  ;;  %s673_s12 = smov [#allocation6]  }
   0x3   :  { %s26_s13 = sshll.u32 %s673_s12, 4  ;;  %s27_s13 = int_to_ptr.vmem [resolvable:$true] %s26_s13 }
   0x4   :  { %s595_s14 = scalar_lea.vmem %s27_s13, 3072  ;;  %p600_p1 = scmp.lt.s32.totalorder %s27_s13, %s27_s13 }
   0x5   :  { %p596_p0 = scmp.ne.s32.totalorder %s27_s13, %s595_s14  ;;  %p601_p2 = scmp.lt.s32.totalorder %s595_s14, %s595_s14 }
   0x7   :  { %p602_p3 = por %p601_p2, %p600_p1 }
   0x9   :  { %p603_p4 = pnand %p602_p3, %p596_p0 }
   0xb   :  { %606 = shalt.err (!%p603_p4)
}
   0xc   :  { %s674_s15 = smov 64   ;;  %s675_s16 = smov 4  }
   0xd   :  { %32 = dma.hbm_to_vmem [thread:$0]  %s745_s1, 3072, %s27_s13, [#allocation7], %s674_s15, %s674_s15, %s675_s16  }
   0xe   :  { %s676_s19 = smov [#allocation3]   ;;  %s677_s21 = smov [#allocation8]  }
   0xf   :  { %s17_s20 = sshll.u32 %s676_s19, 4  ;;  %s39_s22 = sshll.u32 %s677_s21, 4  ;;  %s18_s20 = int_to_ptr.vmem [resolvable:$true] %s17_s20  ;;  %s40_s22 = int_to_ptr.vmem [resolvable:$true] %s39_s22 }
  0x10   :  { %s615_s23 = scalar_lea.vmem %s18_s20, 128  ;;  %p620_p6 = scmp.lt.s32.totalorder %s18_s20, %s18_s20 }
  0x11   :  { %p616_p5 = scmp.ne.s32.totalorder %s18_s20, %s615_s23  ;;  %p621_p7 = scmp.lt.s32.totalorder %s615_s23, %s615_s23 }
  0x13   :  { %p622_p8 = por %p621_p7, %p620_p6 }
  0x15   :  { %p623_p9 = pnand %p622_p8, %p616_p5 }
  0x17   :  { %626 = shalt.err (!%p623_p9)
}
  0x18   :  { %20 = dma.hbm_to_vmem [thread:$0]  %s744_s0, 128, %s18_s20, [#allocation4]  }
  0x19   :  { %s635_s26 = scalar_lea.vmem %s40_s22, 64  ;;  %p640_p11 = scmp.lt.s32.totalorder %s40_s22, %s40_s22 }
  0x1a   :  { %p636_p10 = scmp.ne.s32.totalorder %s40_s22, %s635_s26  ;;  %p641_p12 = scmp.lt.s32.totalorder %s635_s26, %s635_s26 }
  0x1c   :  { %p642_p13 = por %p641_p12, %p640_p11 }
  0x1e   :  { %p643_p0 = pnand %p642_p13, %p636_p10 }
  0x20   :  { %646 = shalt.err (!%p643_p0)
}
  0x21   :  { %42 = dma.hbm_to_vmem [thread:$0]  %s746_s2, 64, %s40_s22, [#allocation7]  }
  0x22   :  { %667 = dma.done.wait [#allocation4], 128  }
  0x23   :  { %668 = vsyncadd [#allocation4], 4294967168 }
  0x24   :  { %669 = dma.done.wait [#allocation7], 3136  }
  0x25   :  { %670 = vsyncadd [#allocation7], 4294964160  ;;  %v678_v0 = vmov 0.0   ;;  %vm679_vm0 = vmmov 0   ;;  %v680_v1 = vmov 0   ;;  %v551_v2 = vld [vmem:[#allocation6 + $0x38] sm:$0xff]   ;;  %v76_v23 = vlaneseq }
  0x26   :  { %482 = vmatprep.subr.bf16.mxu0 %v678_v0  ;;  %498 = vmatprep.mubr.msk.bf16.mxu0 %vm679_vm0, %v678_v0  ;;  %54 = vst [vmem:[#allocation2] sm:$0xf] %v680_v1  ;;  %v552_v3 = vld [vmem:[#allocation6 + $0x30] sm:$0xff]   ;;  %v553_v4 = vld [vmem:[#allocation6 + $0x28] sm:$0xff]   ;;  %v55_v5 = vld [vmem:[#allocation3] sm:$0xff]  ;;  %vm57_vm1 = vcmask 330752  }
  0x27   :  { %502 = vmatprep.subr.bf16.mxu1 %v678_v0  ;;  %518 = vmatprep.mubr.msk.bf16.mxu1 %vm679_vm0, %v678_v0  ;;  %v56_v6 = vpack.c.bf16 %v55_v5, %v55_v5  ;;  %v559_v7 = vld [vmem:[#allocation6 + $0x78] sm:$0xff]   ;;  %v554_v8 = vld [vmem:[#allocation6 + $0x20] sm:$0xff]   ;;  %v560_v9 = vld [vmem:[#allocation6 + $0x70] sm:$0xff]   ;;  %v77_v24 = vshrl.u32 %v76_v23, 7  ;;  %s681_s0 = smov [#allocation9]   ;;  %vm413_vm4 = vcmask 195584  }
  0x28   :  { %483 = vmatpush3.bf16.msra.mxu0 %v551_v2  ;;  %503 = vmatpush3.bf16.msra.mxu1 %v559_v7  ;;  %v555_v10 = vld [vmem:[#allocation6 + $0x18] sm:$0xff]   ;;  %v556_v11 = vld [vmem:[#allocation6 + $0x10] sm:$0xff]   ;;  %v557_v12 = vld [vmem:[#allocation6 + $0x8] sm:$0xff]   ;;  %s421_s2 = sshll.u32 %s681_s0, 4  ;;  %s422_s2 = int_to_ptr.vmem [resolvable:$true] %s421_s2 }
  0x29   :  { %484 = vmatprep.subr.bf16.mxu0 %v678_v0  ;;  %58 = vst.msk [vmem:[#allocation2] sm:$0xf] %vm57_vm1, %v56_v6  ;;  %504 = vmatprep.subr.bf16.mxu1 %v678_v0  ;;  %v558_v13 = vld [vmem:[#allocation6] sm:$0xff]   ;;  %v561_v15 = vld [vmem:[#allocation6 + $0x68] sm:$0xff]   ;;  %v563_v17 = vld [vmem:[#allocation6 + $0x58] sm:$0xff]   ;;  %v78_v25 = vsub.s32 0, %v77_v24  ;;  %p652_p2 = scmp.lt.s32.totalorder %s422_s2, %s422_s2 }
  0x2a   :  { %v562_v16 = vld [vmem:[#allocation6 + $0x60] sm:$0xff]   ;;  %v564_v18 = vld [vmem:[#allocation6 + $0x50] sm:$0xff]   ;;  %v565_v19 = vld [vmem:[#allocation6 + $0x48] sm:$0xff]   ;;  %v196_v47 = vsub.s32 1, %v77_v24  ;;  %v402_v62 = vsub.s32 2, %v77_v24  ;;  %s647_s28 = scalar_lea.vmem %s422_s2, 128 }
  0x2b   :  { %v566_v20 = vld [vmem:[#allocation6 + $0x40] sm:$0xff]   ;;  %v567_v21 = vld [vmem:[#allocation6 + $0xb8] sm:$0xff]   ;;  %v568_v22 = vld [vmem:[#allocation6 + $0xb0] sm:$0xff]   ;;  %p648_p1 = scmp.ne.s32.totalorder %s422_s2, %s647_s28  ;;  %p653_p3 = scmp.lt.s32.totalorder %s647_s28, %s647_s28 }
  0x2c   :  { %485 = vmatpush3.bf16.msra.mxu0 %v552_v3  ;;  %505 = vmatpush3.bf16.msra.mxu1 %v560_v9  ;;  %v53_v26 = vld [vmem:[#allocation8] sm:$0x7]  ;;  %v569_v41 = vld [vmem:[#allocation6 + $0xa8] sm:$0xff]   ;;  %v571_v43 = vld [vmem:[#allocation6 + $0x98] sm:$0xff]  }
  0x2d   :  { %486 = vmatprep.subr.bf16.mxu0 %v678_v0  ;;  %506 = vmatprep.subr.bf16.mxu1 %v678_v0  ;;  %v79_v27 = vrot.slane %v53_v26, %v78_v25  ;;  %v570_v42 = vld [vmem:[#allocation6 + $0xa0] sm:$0xff]   ;;  %v572_v44 = vld [vmem:[#allocation6 + $0x90] sm:$0xff]   ;;  %v573_v45 = vld [vmem:[#allocation6 + $0x88] sm:$0xff]   ;;  %v197_v48 = vrot.slane %v53_v26, %v196_v47  ;;  %v403_v63 = vrot.slane %v53_v26, %v402_v62  ;;  %p654_p4 = por %p653_p3, %p652_p2 }
  0x2e   :  { %v574_v46 = vld [vmem:[#allocation6 + $0x80] sm:$0xff]  }
  0x2f   :  { %p655_p5 = pnand %p654_p4, %p648_p1 }
  0x30   :  { %487 = vmatpush3.bf16.msra.mxu0 %v553_v4  ;;  %v59_v14 = vld [vmem:[#allocation2] sm:$0xf]  ;;  %507 = vmatpush3.bf16.msra.mxu1 %v561_v15 }
  0x31   :  { %488 = vmatprep.subr.bf16.mxu0 %v678_v0  ;;  %508 = vmatprep.subr.bf16.mxu1 %v678_v0 }
  0x34   :  { %489 = vmatpush3.bf16.msra.mxu0 %v554_v8  ;;  %509 = vmatpush3.bf16.msra.mxu1 %v562_v16 }
  0x35   :  { %490 = vmatprep.subr.bf16.mxu0 %v678_v0  ;;  %510 = vmatprep.subr.bf16.mxu1 %v678_v0 }
  0x38   :  { %491 = vmatpush3.bf16.msra.mxu0 %v555_v10  ;;  %511 = vmatpush3.bf16.msra.mxu1 %v563_v17 }
  0x39   :  { %492 = vmatprep.subr.bf16.mxu0 %v678_v0  ;;  %512 = vmatprep.subr.bf16.mxu1 %v678_v0 }
  0x3c   :  { %493 = vmatpush3.bf16.msra.mxu0 %v556_v11  ;;  %513 = vmatpush3.bf16.msra.mxu1 %v564_v18 }
  0x3d   :  { %494 = vmatprep.subr.bf16.mxu0 %v678_v0  ;;  %514 = vmatprep.subr.bf16.mxu1 %v678_v0 }
  0x40   :  { %495 = vmatpush3.bf16.msra.mxu0 %v557_v12  ;;  %515 = vmatpush3.bf16.msra.mxu1 %v565_v19 }
  0x41   :  { %496 = vmatprep.subr.bf16.mxu0 %v678_v0  ;;  %516 = vmatprep.subr.bf16.mxu1 %v678_v0 }
  0x44   :  { %497 = vmatpush3.bf16.msra.mxu0 %v558_v13  ;;  %517 = vmatpush3.bf16.msra.mxu1 %v566_v20 }
  0x45   :  { %522 = vmatprep.subr.bf16.mxu0 %v678_v0 }
  0x47   :  { %499 = vmatmul.mubr.bf16.vlgmr.msra.gmra.mxu0 %v59_v14 }
  0x48   :  { %538 = vmatprep.mubr.msk.bf16.mxu0 %vm679_vm0, %v678_v0  ;;  %523 = vmatpush3.bf16.msra.mxu0 %v567_v21 }
  0x49   :  { %524 = vmatprep.subr.bf16.mxu0 %v678_v0 }
  0x4c   :  { %525 = vmatpush3.bf16.msra.mxu0 %v568_v22 }
  0x4d   :  { %526 = vmatprep.subr.bf16.mxu0 %v678_v0 }
  0x50   :  { %527 = vmatpush3.bf16.msra.mxu0 %v569_v41 }
  0x51   :  { %528 = vmatprep.subr.bf16.mxu0 %v678_v0 }
  0x54   :  { %529 = vmatpush3.bf16.msra.mxu0 %v570_v42 }
  0x55   :  { %530 = vmatprep.subr.bf16.mxu0 %v678_v0 }
  0x58   :  { %531 = vmatpush3.bf16.msra.mxu0 %v571_v43 }
  0x59   :  { %532 = vmatprep.subr.bf16.mxu0 %v678_v0 }
  0x5c   :  { %533 = vmatpush3.bf16.msra.mxu0 %v572_v44 }
  0x5d   :  { %534 = vmatprep.subr.bf16.mxu0 %v678_v0 }
  0x60   :  { %535 = vmatpush3.bf16.msra.mxu0 %v573_v45 }
  0x61   :  { %536 = vmatprep.subr.bf16.mxu0 %v678_v0 }
  0x64   :  { %537 = vmatpush3.bf16.msra.mxu0 %v574_v46 }
 0x107   :  { %v162_v28 = vpop.f32.mrf.mxu0 }
 0x108   :  { %v163_v29 = vadd.f32 %v162_v28, %v79_v27 }
 0x109   :  { %v500_v30 = vpop.f32.mrf.mxu0 }
 0x10a   :  { %v170_v31 = vmul.f32 1.442695, %v163_v29  ;;  %v168_v32 = vmul.f32 0.5, %v163_v29  ;;  %vm174_vm2 = vcmp.gt.f32.partialorder %v163_v29, 0.0 }
 0x10b   :  { %v165_v33 = vpop.f32.mrf.mxu0 }
 0x10c   :  { %575 = vpow2.f32 %v170_v31 }
 0x10d   :  { %v501_v34 = vpop.f32.mrf.mxu0  ;;  %577 = vtanh.f32 %v168_v32 }
 0x119   :  { %v576_v35 = vpop.eup %575 }
 0x11a   :  { %v172_v36 = vadd.f32 1.0, %v576_v35  ;;  %v578_v37 = vpop.eup %577 }
 0x11c   :  { %v173_v38 = vmul.f32 %v578_v37, %v172_v36 }
 0x11e   :  { %v175_v39 = vsel %vm174_vm2, %v163_v29, %v173_v38 }
 0x11f   :  { %v176_v40 = vpack.c.bf16 %v175_v39, %v175_v39 }
 0x121   :  { %519 = vmatmul.mubr.bf16.vlgmr.msra.gmra.mxu1 %v176_v40 }
 0x1e1   :  { %v280_v49 = vpop.f32.mrf.mxu1 }
 0x1e2   :  { %v281_v50 = vadd.f32 %v280_v49, %v197_v48 }
 0x1e3   :  { %v520_v51 = vpop.f32.mrf.mxu1 }
 0x1e4   :  { %v288_v52 = vmul.f32 1.442695, %v281_v50  ;;  %v286_v53 = vmul.f32 0.5, %v281_v50  ;;  %vm292_vm3 = vcmp.gt.f32.partialorder %v281_v50, 0.0 }
 0x1e5   :  { %v283_v54 = vpop.f32.mrf.mxu1 }
 0x1e6   :  { %579 = vpow2.f32 %v288_v52 }
 0x1e7   :  { %v521_v55 = vpop.f32.mrf.mxu1  ;;  %581 = vtanh.f32 %v286_v53 }
 0x1f3   :  { %v580_v56 = vpop.eup %579 }
 0x1f4   :  { %v290_v57 = vadd.f32 1.0, %v580_v56  ;;  %v582_v58 = vpop.eup %581 }
 0x1f6   :  { %v291_v59 = vmul.f32 %v582_v58, %v290_v57 }
 0x1f8   :  { %v293_v60 = vsel %vm292_vm3, %v281_v50, %v291_v59 }
 0x1f9   :  { %v294_v61 = vpack.c.bf16 %v293_v60, %v293_v60 }
 0x1fb   :  { %539 = vmatmul.mubr.bf16.vlgmr.msra.gmra.mxu0 %v294_v61 }
 0x2bb   :  { %v394_v0 = vpop.f32.mrf.mxu0 }
 0x2bc   :  { %v404_v1 = vadd.f32 %v403_v63, %v394_v0 }
 0x2bd   :  { %v540_v2 = vpop.f32.mrf.mxu0 }
 0x2be   :  { %v407_v3 = vmul.f32 1.442695, %v404_v1  ;;  %v405_v4 = vmul.f32 0.5, %v404_v1  ;;  %vm411_vm5 = vcmp.gt.f32.partialorder %v404_v1, 0.0 }
 0x2bf   :  { %v397_v5 = vpop.f32.mrf.mxu0 }
 0x2c0   :  { %583 = vpow2.f32 %v407_v3 }
 0x2c1   :  { %v541_v6 = vpop.f32.mrf.mxu0  ;;  %585 = vtanh.f32 %v405_v4 }
 0x2cd   :  { %v584_v7 = vpop.eup %583 }
 0x2ce   :  { %v409_v8 = vadd.f32 1.0, %v584_v7  ;;  %v586_v9 = vpop.eup %585 }
 0x2d0   :  { %v410_v10 = vmul.f32 %v586_v9, %v409_v8 }
 0x2d2   :  { %v412_v11 = vsel %vm411_vm5, %v404_v1, %v410_v10 }
 0x2d3   :  { %414 = vst.msk [vmem:[#allocation9] sm:$0xff] %vm413_vm4, %v412_v11 }
 0x2d4   :  { %658 = shalt.err (!%p655_p5)
}
 0x2d5   :  { %424 = dma.vmem_to_hbm [thread:$0]  %s422_s2, 128, %s747_s3, [#allocation5]  }
 0x2d6   :  { %671 = dma.done.wait [#allocation5], 128  }
 0x2d7   :  { %672 = vsyncadd [#allocation5], 4294967168 }
 0x2d8   :  { %428 = vsyncpa [#allocation4], 1 }
 0x2d9   :  { %429 = vsyncpa [#allocation7], 1 }
 0x2da   :  { %430 = vsyncpa [#allocation5], 1 }

</bundles_post_ra>
